<compile_context>
chip_gen: v6e
topology: v6e:2x2x1
jax: 0.10.0
libtpu: 0.0.40
codegen_flags: <defaults>
</compile_context>

<pallas_src>
import functools

import jax
import jax.numpy as jnp
from jax import lax
from jax.experimental import pallas as pl
from jax.experimental.pallas import tpu as pltpu


def _embeddings_kernel(ids_ref,            # scalar-prefetch (SMEM): flat token ids
                       tok_hbm, pos_ref,   # inputs: token table (HBM), pos-embed tile (TS, D)
                       out_ref,            # output tile (TS, D)
                       tok_scratch, sem,   # scratch: (TS, D) VMEM, single DMA semaphore
                       *, ts, unroll):
    base = pl.multiple_of(pl.program_id(0) * ts, 8)

    # Issue all TS row gathers back-to-back on one semaphore. Each row lands in
    # its own scratch row, so there is no buffer reuse to protect and no wait
    # inside the loop.
    def issue(r, carry):
        tid = ids_ref[base + r]
        pltpu.make_async_copy(
            tok_hbm.at[pl.ds(tid, 1), :],
            tok_scratch.at[pl.ds(r, 1), :],
            sem,
        ).start()
        return carry

    lax.fori_loop(0, ts, issue, 0, unroll=unroll)

    # One accumulated wait: DMA semaphores count bytes, and the TS row copies
    # above signal exactly one full (TS, D) scratch tile's worth of bytes.
    pltpu.make_async_copy(tok_scratch, tok_scratch, sem).wait()

    # Single dense VPU pass over the whole tile; accumulate in f32 (v5e has no
    # bf16 VALU) and cast once on the dense store.
    acc = tok_scratch[...].astype(jnp.float32) + pos_ref[...].astype(jnp.float32)
    out_ref[...] = acc.astype(out_ref.dtype)


def clipseg_text_embeddings(input_ids, token_table, pos_table,
                            position_ids=None, *, ts=1024, unroll=8):
    """Pallas equivalent of CLIPSegTextEmbeddings.forward on the input_ids path."""
    # TODO(synk): the optional `inputs_embeds` branch of the PyTorch forward
    # (precomputed token embeddings) is not implemented; only input_ids is.
    B, S = input_ids.shape
    V, D = token_table.shape
    P, Dp = pos_table.shape
    assert D == Dp, "hidden size mismatch between token and position tables"

    # Position ids: module default is arange(seq_length); accept (S,), (1, S)
    # or per-batch (B, S) without silently collapsing batches.
    if position_ids is None:
        position_ids = jnp.arange(S, dtype=jnp.int32)[None, :]
    position_ids = jnp.asarray(position_ids, dtype=jnp.int32)
    if position_ids.ndim == 1:
        position_ids = position_ids[None, :]
    position_ids = jnp.broadcast_to(position_ids[:, :S], (B, S))

    N = B * S
    # Tokens per grid step: sublane multiple; capped so the grid has >= 2
    # chunks whenever N allows (v7x megacore needs >= 1 chunk per core).
    ts = max(8, (int(ts) // 8) * 8)
    half_up = ((N + 1) // 2 + 7) // 8 * 8
    ts = min(ts, max(8, half_up))
    unroll = max(1, min(int(unroll), ts))
    n_pad = -(-N // ts) * ts

    flat_ids = input_ids.reshape(N).astype(jnp.int32)
    flat_pos = position_ids.reshape(N)
    if n_pad != N:
        flat_ids = jnp.pad(flat_ids, (0, n_pad - N))   # pad with id 0 (valid row)
        flat_pos = jnp.pad(flat_pos, (0, n_pad - N))

    # Pre-gather the (tiny-table) position embeddings with plain XLA so the
    # kernel's position add is a dense tiled input, not per-row masked stores.
    pos_embed = jnp.take(pos_table, flat_pos, axis=0).astype(token_table.dtype)

    kernel = functools.partial(_embeddings_kernel, ts=ts, unroll=unroll)

    out_flat = pl.pallas_call(
        kernel,
        out_shape=jax.ShapeDtypeStruct((n_pad, D), token_table.dtype),
        grid_spec=pltpu.PrefetchScalarGridSpec(
            num_scalar_prefetch=1,                        # flat token ids -> SMEM
            grid=(n_pad // ts,),
            in_specs=[
                pl.BlockSpec(memory_space=pl.ANY),             # token table stays in HBM
                pl.BlockSpec((ts, D), lambda i, ids: (i, 0)),  # pre-gathered pos slab
            ],
            out_specs=pl.BlockSpec((ts, D), lambda i, ids: (i, 0)),
            scratch_shapes=[
                pltpu.VMEM((ts, D), token_table.dtype),        # gathered token rows
                pltpu.SemaphoreType.DMA,                       # single gather semaphore
            ],
        ),
        compiler_params=pltpu.CompilerParams(
            dimension_semantics=("parallel",),   # chunks are independent (v7x megacore)
        ),
    )(flat_ids, token_table, pos_embed)

    return out_flat[:N].reshape(B, S, D)


if __name__ == "__main__":
    # Small config consistent with the module's __init__:
    VOCAB = 64          # config.vocab_size
    MAX_POS = 16        # config.max_position_embeddings
    HIDDEN = 32         # config.hidden_size (real CLIPSeg D=512 is lane-dense)
    B, S = 2, 8         # batch, seq_length

    key = jax.random.PRNGKey(0)
    k_tok, k_pos, k_ids = jax.random.split(key, 3)

    token_table = (0.02 * jax.random.normal(k_tok, (VOCAB, HIDDEN))).astype(jnp.float32)
    pos_table = (0.02 * jax.random.normal(k_pos, (MAX_POS, HIDDEN))).astype(jnp.float32)

    input_ids = jax.random.randint(k_ids, (B, S), 0, VOCAB, dtype=jnp.int32)
    position_ids = jnp.arange(S, dtype=jnp.int32)   # module default positions

    out = clipseg_text_embeddings(input_ids, token_table, pos_table, position_ids)
    out = jax.block_until_ready(out)

    # Pure-JAX reference: token_embedding(input_ids) + position_embedding(position_ids).
    ref = token_table[input_ids] + pos_table[position_ids][None, :, :]

    assert out.shape == (B, S, HIDDEN), out.shape
    assert jnp.allclose(out, ref, atol=1e-6, rtol=1e-6), "mismatch vs reference"

    print("KERNEL_OK")
</pallas_src>

<mosaic_0001>
module attributes {stable_mosaic.version = 11 : i64} {
  func.func @_embeddings_kernel(%arg0: i32, %arg1: memref<16xi32, #tpu.memory_space<smem>>, %arg2: memref<64x32xf32, #tpu.memory_space<any>>, %arg3: memref<8x32xf32, #tpu.memory_space<vmem>>, %arg4: memref<8x32xf32, #tpu.memory_space<vmem>>, %arg5: memref<8x32xf32, #tpu.memory_space<vmem>>, %arg6: memref<!tpu.dma_semaphore, #tpu.memory_space<semaphore_mem>>) attributes {dimension_semantics = [#tpu.dimension_semantics<parallel>], iteration_bounds = array<i64: 2>, scalar_prefetch = 1 : i64, scratch_operands = 2 : i64, tpu.core_type = #tpu.core_type<tc>, window_params = [{}, {transform_indices = @transform_1, window_bounds = array<i64: 8, 32>}, {transform_indices = @transform_2, window_bounds = array<i64: 8, 32>}]} {
    %c8_i32 = arith.constant 8 : i32
    %0 = arith.muli %arg0, %c8_i32 : i32
    %1 = tpu.assume_multiple %0, 8 : i32
    %c0_i32 = arith.constant 0 : i32
    %2 = arith.addi %1, %c0_i32 : i32
    %3 = arith.index_cast %2 : i32 to index
    %4 = memref.load %arg1[%3] : memref<16xi32, #tpu.memory_space<smem>>
    %c0_i32_0 = arith.constant 0 : i32
    %5 = tpu.memref_slice %arg2[%4, %c0_i32_0] : memref<64x32xf32, #tpu.memory_space<any>> -> memref<1x32xf32, #tpu.memory_space<any>>
    %c0_i32_1 = arith.constant 0 : i32
    %6 = tpu.memref_slice %arg5[%c0_i32, %c0_i32_1] : memref<8x32xf32, #tpu.memory_space<vmem>> -> memref<1x32xf32, #tpu.memory_space<vmem>>
    tpu.enqueue_dma source(%5 : memref<1x32xf32, #tpu.memory_space<any>>) target(%6 : memref<1x32xf32, #tpu.memory_space<vmem>>) target_semaphore(%arg6 : memref<!tpu.dma_semaphore, #tpu.memory_space<semaphore_mem>>)
    %c1_i32 = arith.constant 1 : i32
    %7 = arith.addi %1, %c1_i32 : i32
    %8 = arith.index_cast %7 : i32 to index
    %9 = memref.load %arg1[%8] : memref<16xi32, #tpu.memory_space<smem>>
    %c0_i32_2 = arith.constant 0 : i32
    %10 = tpu.memref_slice %arg2[%9, %c0_i32_2] : memref<64x32xf32, #tpu.memory_space<any>> -> memref<1x32xf32, #tpu.memory_space<any>>
    %c0_i32_3 = arith.constant 0 : i32
    %11 = tpu.memref_slice %arg5[%c1_i32, %c0_i32_3] : memref<8x32xf32, #tpu.memory_space<vmem>> -> memref<1x32xf32, #tpu.memory_space<vmem>>
    tpu.enqueue_dma source(%10 : memref<1x32xf32, #tpu.memory_space<any>>) target(%11 : memref<1x32xf32, #tpu.memory_space<vmem>>) target_semaphore(%arg6 : memref<!tpu.dma_semaphore, #tpu.memory_space<semaphore_mem>>)
    %c2_i32 = arith.constant 2 : i32
    %12 = arith.addi %1, %c2_i32 : i32
    %13 = arith.index_cast %12 : i32 to index
    %14 = memref.load %arg1[%13] : memref<16xi32, #tpu.memory_space<smem>>
    %c0_i32_4 = arith.constant 0 : i32
    %15 = tpu.memref_slice %arg2[%14, %c0_i32_4] : memref<64x32xf32, #tpu.memory_space<any>> -> memref<1x32xf32, #tpu.memory_space<any>>
    %c0_i32_5 = arith.constant 0 : i32
    %16 = tpu.memref_slice %arg5[%c2_i32, %c0_i32_5] : memref<8x32xf32, #tpu.memory_space<vmem>> -> memref<1x32xf32, #tpu.memory_space<vmem>>
    tpu.enqueue_dma source(%15 : memref<1x32xf32, #tpu.memory_space<any>>) target(%16 : memref<1x32xf32, #tpu.memory_space<vmem>>) target_semaphore(%arg6 : memref<!tpu.dma_semaphore, #tpu.memory_space<semaphore_mem>>)
    %c3_i32 = arith.constant 3 : i32
    %17 = arith.addi %1, %c3_i32 : i32
    %18 = arith.index_cast %17 : i32 to index
    %19 = memref.load %arg1[%18] : memref<16xi32, #tpu.memory_space<smem>>
    %c0_i32_6 = arith.constant 0 : i32
    %20 = tpu.memref_slice %arg2[%19, %c0_i32_6] : memref<64x32xf32, #tpu.memory_space<any>> -> memref<1x32xf32, #tpu.memory_space<any>>
    %c0_i32_7 = arith.constant 0 : i32
    %21 = tpu.memref_slice %arg5[%c3_i32, %c0_i32_7] : memref<8x32xf32, #tpu.memory_space<vmem>> -> memref<1x32xf32, #tpu.memory_space<vmem>>
    tpu.enqueue_dma source(%20 : memref<1x32xf32, #tpu.memory_space<any>>) target(%21 : memref<1x32xf32, #tpu.memory_space<vmem>>) target_semaphore(%arg6 : memref<!tpu.dma_semaphore, #tpu.memory_space<semaphore_mem>>)
    %c4_i32 = arith.constant 4 : i32
    %22 = arith.addi %1, %c4_i32 : i32
    %23 = arith.index_cast %22 : i32 to index
    %24 = memref.load %arg1[%23] : memref<16xi32, #tpu.memory_space<smem>>
    %c0_i32_8 = arith.constant 0 : i32
    %25 = tpu.memref_slice %arg2[%24, %c0_i32_8] : memref<64x32xf32, #tpu.memory_space<any>> -> memref<1x32xf32, #tpu.memory_space<any>>
    %c0_i32_9 = arith.constant 0 : i32
    %26 = tpu.memref_slice %arg5[%c4_i32, %c0_i32_9] : memref<8x32xf32, #tpu.memory_space<vmem>> -> memref<1x32xf32, #tpu.memory_space<vmem>>
    tpu.enqueue_dma source(%25 : memref<1x32xf32, #tpu.memory_space<any>>) target(%26 : memref<1x32xf32, #tpu.memory_space<vmem>>) target_semaphore(%arg6 : memref<!tpu.dma_semaphore, #tpu.memory_space<semaphore_mem>>)
    %c5_i32 = arith.constant 5 : i32
    %27 = arith.addi %1, %c5_i32 : i32
    %28 = arith.index_cast %27 : i32 to index
    %29 = memref.load %arg1[%28] : memref<16xi32, #tpu.memory_space<smem>>
    %c0_i32_10 = arith.constant 0 : i32
    %30 = tpu.memref_slice %arg2[%29, %c0_i32_10] : memref<64x32xf32, #tpu.memory_space<any>> -> memref<1x32xf32, #tpu.memory_space<any>>
    %c0_i32_11 = arith.constant 0 : i32
    %31 = tpu.memref_slice %arg5[%c5_i32, %c0_i32_11] : memref<8x32xf32, #tpu.memory_space<vmem>> -> memref<1x32xf32, #tpu.memory_space<vmem>>
    tpu.enqueue_dma source(%30 : memref<1x32xf32, #tpu.memory_space<any>>) target(%31 : memref<1x32xf32, #tpu.memory_space<vmem>>) target_semaphore(%arg6 : memref<!tpu.dma_semaphore, #tpu.memory_space<semaphore_mem>>)
    %c6_i32 = arith.constant 6 : i32
    %32 = arith.addi %1, %c6_i32 : i32
    %33 = arith.index_cast %32 : i32 to index
    %34 = memref.load %arg1[%33] : memref<16xi32, #tpu.memory_space<smem>>
    %c0_i32_12 = arith.constant 0 : i32
    %35 = tpu.memref_slice %arg2[%34, %c0_i32_12] : memref<64x32xf32, #tpu.memory_space<any>> -> memref<1x32xf32, #tpu.memory_space<any>>
    %c0_i32_13 = arith.constant 0 : i32
    %36 = tpu.memref_slice %arg5[%c6_i32, %c0_i32_13] : memref<8x32xf32, #tpu.memory_space<vmem>> -> memref<1x32xf32, #tpu.memory_space<vmem>>
    tpu.enqueue_dma source(%35 : memref<1x32xf32, #tpu.memory_space<any>>) target(%36 : memref<1x32xf32, #tpu.memory_space<vmem>>) target_semaphore(%arg6 : memref<!tpu.dma_semaphore, #tpu.memory_space<semaphore_mem>>)
    %c7_i32 = arith.constant 7 : i32
    %37 = arith.addi %1, %c7_i32 : i32
    %38 = arith.index_cast %37 : i32 to index
    %39 = memref.load %arg1[%38] : memref<16xi32, #tpu.memory_space<smem>>
    %c0_i32_14 = arith.constant 0 : i32
    %40 = tpu.memref_slice %arg2[%39, %c0_i32_14] : memref<64x32xf32, #tpu.memory_space<any>> -> memref<1x32xf32, #tpu.memory_space<any>>
    %c0_i32_15 = arith.constant 0 : i32
    %41 = tpu.memref_slice %arg5[%c7_i32, %c0_i32_15] : memref<8x32xf32, #tpu.memory_space<vmem>> -> memref<1x32xf32, #tpu.memory_space<vmem>>
    tpu.enqueue_dma source(%40 : memref<1x32xf32, #tpu.memory_space<any>>) target(%41 : memref<1x32xf32, #tpu.memory_space<vmem>>) target_semaphore(%arg6 : memref<!tpu.dma_semaphore, #tpu.memory_space<semaphore_mem>>)
    %c8_i32_16 = arith.constant 8 : i32
    tpu.wait_dma2 semaphore(%arg6 : memref<!tpu.dma_semaphore, #tpu.memory_space<semaphore_mem>>) src(%arg5 : memref<8x32xf32, #tpu.memory_space<vmem>>) dst(%arg5 : memref<8x32xf32, #tpu.memory_space<vmem>>)
    %c0 = arith.constant 0 : index
    %c0_17 = arith.constant 0 : index
    %42 = vector.load %arg5[%c0, %c0_17] : memref<8x32xf32, #tpu.memory_space<vmem>>, vector<8x32xf32>
    %c0_18 = arith.constant 0 : index
    %c0_19 = arith.constant 0 : index
    %43 = vector.load %arg3[%c0_18, %c0_19] : memref<8x32xf32, #tpu.memory_space<vmem>>, vector<8x32xf32>
    %44 = arith.addf %42, %43 : vector<8x32xf32>
    %c0_20 = arith.constant 0 : index
    %c0_21 = arith.constant 0 : index
    %45 = vector.load %arg4[%c0_20, %c0_21] : memref<8x32xf32, #tpu.memory_space<vmem>>, vector<8x32xf32>
    tpu.vector_store %arg4[%c0_20, %c0_21], %44 {strides = array<i32>} : memref<8x32xf32, #tpu.memory_space<vmem>>, vector<8x32xf32>,
    return
  }
  func.func @transform_1(%arg0: i32, %arg1: memref<16xi32, #tpu.memory_space<smem>>) -> (i32, i32) {
    %c0_i32 = arith.constant 0 : i32
    %c0_i32_0 = arith.constant 0 : i32
    return %arg0, %c0_i32 : i32, i32
  }
  func.func @transform_2(%arg0: i32, %arg1: memref<16xi32, #tpu.memory_space<smem>>) -> (i32, i32) {
    %c0_i32 = arith.constant 0 : i32
    %c0_i32_0 = arith.constant 0 : i32
    return %arg0, %c0_i32 : i32, i32
  }
}

</mosaic_0001>

<bundles_post_ra>
// kernel: tpu_custom_call.1
= control target key start
LH: loop header
LB: loop body
LE: loop exit
PB: predicated region body
PF: predicated region fallthrough
CT: control target
= control target key end

     0   :  { %s992_s0 = inlined_call_operand.vmem [shape: s32[16], index: 0, kind: input, shape index: {}]   ;;  %s993_s1 = inlined_call_operand.vmem [shape: f32[64,32], index: 1, kind: input, shape index: {}]   ;;  %s994_s2 = inlined_call_operand.vmem [shape: f32[16,32], index: 2, kind: input, shape index: {}]   ;;  %s995_s3 = inlined_call_operand.hbm [shape: f32[16,32], index: 3, kind: output, shape index: {}]  }
   0x1   :  { %s8_s14 = sshll.u32 %s992_s0, 4  ;;  %s9_s14 = int_to_ptr.vmem [resolvable:$true] %s8_s14 }
   0x2   :  { %s753_s15 = scalar_lea.vmem %s9_s14, 16  ;;  %p758_p1 = scmp.lt.s32.totalorder %s9_s14, %s9_s14 }
   0x3   :  { %p754_p0 = scmp.ne.s32.totalorder %s9_s14, %s753_s15  ;;  %p759_p2 = scmp.lt.s32.totalorder %s753_s15, %s753_s15 }
   0x5   :  { %p760_p3 = por %p759_p2, %p758_p1 }
   0x7   :  { %p761_p4 = pnand %p760_p3, %p754_p0 }
   0x9   :  { %764 = shalt.err (!%p761_p4)  }
   0xa   :  { %s831_s16 = smov [#allocation5]  }
   0xb   :  { %11 = dma.vmem_to_smem %s9_s14, 16, %s831_s16, [#allocation4] }
   0xc   :  { %807 = dma.done.wait [#allocation4], 16 }
   0xd   :  { %808 = vsyncadd [#allocation4], 4294967280 }
   0xe   :  { %13 = sfence }
   0xf   :  { %14 = vsyncpa [#allocation7], 0 }
  0x10   :  { %16 = vsyncpa [#allocation7 + $0x1], 0  ;;  %s856_s17 = smov 0   ;;  %s858_s18 = smov 0  }
  0x11   :  { %s860_s0 = smov 0   ;;  %s862_s19 = smov 0  }
  0x12 LB: > { %s877_s20 = sadd.s32 4294967295, %s829_s19   ;;  %s701_s21 = sadd.s32 4294967294, %s829_s19   ;;  %s829_s19 = sphi %s862_s19, %s1001_s19   ;;  %s825_s0 = sphi %s860_s0, %s1000_s0   ;;  %s821_s18 = sphi %s858_s18, %s999_s18   ;;  %s817_s17 = sphi %s856_s17, %s998_s17  }
  0x13   : > { %s881_s22 = sadd.s32 1, %s829_s19   ;;  %s55_s23 = sadd.s32 1, %s825_s0 }
  0x14   : > { %s52_s24 = ssub.s32 %s829_s19, %s881_s22  ;;  %p65_p5 = scmp.ne.s32.totalorder %s825_s0, %s821_s18 }
  0x15   : > { %p53_p6 = scmp.eq.s32.totalorder %s52_s24, 0  ;;  %p66_p7 = scmp.eq.s32.totalorder %s877_s20, 1 }
  0x16   : > { %p71_p8 = scmp.ne.s32.totalorder %s821_s18, %s817_s17  ;;  %p72_p9 = scmp.eq.s32.totalorder %s701_s21, 1 }
  0x17   : > { %s892_s25 = scalar_select %p53_p6, %s825_s0, %s55_s23  }
  0x18   : > { %p894_p10 = por %p66_p7, %p65_p5  ;;  %p898_p11 = por %p72_p9, %p71_p8 }
  0x19   : > { %p704_p12 = scmp.ge.s32.totalorder %s829_s19, 1  ;;  %p97_p13 = scmp.lt.s32.totalorder %s829_s19, 3 }
  0x1b   : > { %p98_p0 = pnand %p704_p12, %p97_p13 }
  0x1c   : > { %s113_s28 = sand.u32 (!%p98_p0), 1, %s821_s18   ;;  %p116_p1 = scmp.lt.s32.totalorder (!%p98_p0), %s877_s20, 1 }
  0x1d   : > { %101 = sbr.rel (%p98_p0) target bundleno = 135 (0x87), region = 24  ;;  %s908_s29 = sshll.u32 (!%p98_p0), %s113_s28, 3 }
  0x1e   : > { %s911_s30 = sshll.u32 (!%p98_p0), %s877_s20, 3  ;;  %s115_s13 = scalar_lea.vmem (!%p98_p0), [#allocation6], %s908_s29 }
  0x1f   : > { %s121_s4 = sld [smem:[#allocation5 + %s911_s30]] (!%p98_p0) }
  0x22   : > { %s117_s5 = scalar_select %p116_p1, %s877_s20, 1 }
  0x24   : > { %s706_s6 = sshll.u32 %s117_s5, 3 }
  0x25   : > { %s918_s9 = scalar_lea.vmem %s994_s2, %s706_s6  ;;  %s122_s12 = scalar_lea.vmem %s993_s1, %s121_s4 }
  0x26   : > { %v141_v0 = vld [vmem:[%s122_s12] sm:$0x1] }
  0x27   : > { %142 = vst [vmem:[#allocation2] sm:$0x1] %v141_v0 }
  0x28   : > { %168 = vsyncadd [#allocation3], 16  ;;  %s169_s14 = sadd.s32 1, %s911_s30 }
  0x29   : > { %s170_s15 = sld [smem:[#allocation5 + %s169_s14]] }
  0x2f   : > { %s171_s23 = scalar_lea.vmem %s993_s1, %s170_s15 }
  0x30   : > { %v191_v1 = vld [vmem:[%s171_s23] sm:$0x1] }
  0x31   : > { %192 = vst [vmem:[#allocation2 + $0x1] sm:$0x1] %v191_v1 }
  0x32   : > { %218 = vsyncadd [#allocation3], 16  ;;  %s219_s24 = sadd.s32 2, %s911_s30 }
  0x33   : > { %s220_s5 = sld [smem:[#allocation5 + %s219_s24]] }
  0x39   : > { %s221_s4 = scalar_lea.vmem %s993_s1, %s220_s5 }
  0x3a   : > { %v241_v2 = vld [vmem:[%s221_s4] sm:$0x1] }
  0x3b   : > { %242 = vst [vmem:[#allocation2 + $0x2] sm:$0x1] %v241_v2 }
  0x3c   : > { %268 = vsyncadd [#allocation3], 16  ;;  %s269_s8 = sadd.s32 3, %s911_s30 }
  0x3d   : > { %s270_s10 = sld [smem:[#allocation5 + %s269_s8]] }
  0x43   : > { %s271_s14 = scalar_lea.vmem %s993_s1, %s270_s10 }
  0x44   : > { %v291_v3 = vld [vmem:[%s271_s14] sm:$0x1] }
  0x45   : > { %292 = vst [vmem:[#allocation2 + $0x3] sm:$0x1] %v291_v3 }
  0x46   : > { %318 = vsyncadd [#allocation3], 16  ;;  %s319_s15 = sadd.s32 4, %s911_s30 }
  0x47   : > { %s320_s16 = sld [smem:[#allocation5 + %s319_s15]] }
  0x4d   : > { %s321_s24 = scalar_lea.vmem %s993_s1, %s320_s16 }
  0x4e   : > { %v341_v4 = vld [vmem:[%s321_s24] sm:$0x1] }
  0x4f   : > { %342 = vst [vmem:[#allocation2 + $0x4] sm:$0x1] %v341_v4 }
  0x50   : > { %368 = vsyncadd [#allocation3], 16  ;;  %s369_s5 = sadd.s32 5, %s911_s30 }
  0x51   : > { %s370_s6 = sld [smem:[#allocation5 + %s369_s5]] }
  0x57   : > { %s371_s8 = scalar_lea.vmem %s993_s1, %s370_s6 }
  0x58   : > { %v391_v5 = vld [vmem:[%s371_s8] sm:$0x1] }
  0x59   : > { %392 = vst [vmem:[#allocation2 + $0x5] sm:$0x1] %v391_v5 }
  0x5a   : > { %418 = vsyncadd [#allocation3], 16  ;;  %s419_s10 = sadd.s32 6, %s911_s30 }
  0x5b   : > { %s420_s11 = sld [smem:[#allocation5 + %s419_s10]] }
  0x61   : > { %s421_s15 = scalar_lea.vmem %s993_s1, %s420_s11 }
  0x62   : > { %v441_v6 = vld [vmem:[%s421_s15] sm:$0x1] }
  0x63   : > { %442 = vst [vmem:[#allocation2 + $0x6] sm:$0x1] %v441_v6 }
  0x64   : > { %468 = vsyncadd [#allocation3], 16  ;;  %s469_s16 = sadd.s32 7, %s911_s30 }
  0x65   : > { %s470_s21 = sld [smem:[#allocation5 + %s469_s16]] }
  0x6b   : > { %s471_s5 = scalar_lea.vmem %s993_s1, %s470_s21 }
  0x6c   : > { %v491_v7 = vld [vmem:[%s471_s5] sm:$0x1] }
  0x6d   : > { %492 = vst [vmem:[#allocation2 + $0x7] sm:$0x1] %v491_v7 }
  0x6e   : > { %518 = vsyncadd [#allocation3], 16 }
  0x6f   : > { %809 = dma.done.wait [#allocation3], 128 }
  0x70   : > { %810 = vsyncadd [#allocation3], 4294967168  ;;  %s709_s6 = sshll.u32 %s877_s20, 7  ;;  %s541_s7 = sshll.u32 %s115_s13, 4  ;;  %v523_v9 = vld [vmem:[%s918_s9] sm:$0xff]  ;;  %vm525_vm0 = vcmask 261120   ;;  %s542_s7 = int_to_ptr.vmem [resolvable:$true] %s541_s7 }
  0x71   : > { %s539_s8 = scalar_lea.hbm %s995_s3, %s709_s6  ;;  %s528_s10 = scalar_lea.sflag [#allocation7], %s113_s28 }
  0x72   : > { %s765_s11 = scalar_lea.vmem %s542_s7, 128  ;;  %s832_s20 = smov [#allocation6]  }
  0x73   : > { %p766_p2 = scmp.ne.s32.totalorder %s542_s7, %s765_s11  ;;  %s769_s12 = sshll.u32 %s832_s20, 4  ;;  %s770_s12 = int_to_ptr.vmem [resolvable:$false] %s769_s12 }
  0x74   : > { %v522_v8 = vld [vmem:[#allocation2] sm:$0xff]  ;;  %s771_s9 = scalar_lea.vmem %s770_s12, 256  ;;  %p772_p5 = scmp.lt.s32.totalorder %s542_s7, %s770_s12 }
  0x75   : > { %v524_v10 = vadd.f32 %v523_v9, %v522_v8  ;;  %p767_p3 = pnand %p766_p2, %p894_p10  ;;  %p773_p6 = scmp.lt.s32.totalorder %s771_s9, %s765_s11 }
  0x77   : > { %526 = vst.msk [vmem:[%s115_s13] sm:$0xff] %vm525_vm0, %v524_v10  ;;  %p768_p4 = pneg %p767_p3  ;;  %p774_p7 = por %p773_p6, %p772_p5 }
  0x79   : > { %p775_p8 = pnand %p774_p7, %p768_p4 }
  0x7b   : > { %778 = shalt.err (!%p775_p8)
}
  0x7c   : > { %s779_s14 = scalar_lea.hbm %s539_s8, 128  ;;  %s783_s13 = scalar_lea.hbm %s995_s3, 256 }
  0x7d   : > { %p780_p9 = scmp.ne.s32.totalorder %s539_s8, %s779_s14  ;;  %p784_p0 = scmp.lt.s32.totalorder %s539_s8, %s995_s3 }
  0x7e   : > { %p785_p1 = scmp.lt.s32.totalorder %s783_s13, %s779_s14 }
  0x7f   : > { %p781_p12 = pnand %p780_p9, %p894_p10 }
  0x80   : > { %p786_p2 = por %p785_p1, %p784_p0 }
  0x81   : > { %p782_p13 = pneg %p781_p12 }
  0x83   : > { %p787_p3 = pnand %p786_p2, %p782_p13 }
  0x85   : > { %790 = shalt.err (!%p787_p3)
}
  0x86   : > { %713 = dma.vmem_to_hbm [thread:$0]  (%p894_p10), %s542_s7, 128, %s539_s8, %s528_s10  }
  0x87 PF: > { %p719_p4 = scmp.ge.s32.totalorder %s829_s19, 2  ;;  %s553_s21 = sand.u32 1, %s817_s17  }
  0x88   : > { %s554_s23 = scalar_lea.sflag [#allocation7], %s553_s21 }
  0x89   : > { %p716_p5 = pnand %p719_p4, %p898_p11 }
  0x8b   : > { %p717_p6 = pneg %p716_p5 }
  0x8d   : > { %812 = dma.done.wait (%p717_p6), %s554_s23, 128  }
  0x8e   : > { %814 = vsyncadd (%p717_p6), %s554_s23, 4294967168  ;;  %p19_p7 = scmp.ge.s32.totalorder %s881_s22, 4   ;;  %s998_s17 = smov %s821_s18 }
  0x8f   : > { %s999_s18 = smov %s825_s0  ;;  %s1000_s0 = smov %s892_s25 }
  0x90   : > { %s1001_s19 = smov %s881_s22  ;;  %21 = sbr.rel (!%p19_p7) target bundleno = 18 (0x12), region = 394 }
  0x95   :  { %559 = vsyncpa [#allocation7], 1 }
  0x96   :  { %561 = vsyncpa [#allocation7 + $0x1], 1 }
  0x97   :  { %562 = vsyncmov [#allocation3] }
  0x9a   :  { %s563_s19 = vpop.sfrf %562 }
  0x9b   :  { %p712_p10 = scmp.ne.s32.totalorder %s563_s19, 0 }
  0x9d   :  { %567 = shalt.err (%p712_p10)  }

</bundles_post_ra>
